<compile_context>
chip_gen: v7x
topology: tpu7x:2x2x1
jax: 0.10.0
libtpu: 0.0.40
codegen_flags: <defaults>
</compile_context>

<pallas_src>
import jax
import jax.numpy as jnp
from jax import lax
from jax.experimental import pallas as pl
from jax.experimental.pallas import tpu as pltpu


def _round_up(x, m):
    return ((x + m - 1) // m) * m


# --------------------------------------------------------------------------
# Pallas kernel 1: per-column NaN-aware sum / sample count / unnormalized
# variance (hot reduction path of _incremental_mean_and_var).
# Output rows: 0 = sum, 1 = count, 2 = M2 (= unnormalized variance).
# --------------------------------------------------------------------------
def col_stats(x, *, tile_rows=1024, tile_feats=512):
    n, f = x.shape
    tr = min(_round_up(tile_rows, 8), _round_up(n, 8))
    tf = min(_round_up(tile_feats, 128), _round_up(f, 128))
    n_row_blocks = pl.cdiv(n, tr)
    n_feat_blocks = pl.cdiv(f, tf)
    f_pad = n_feat_blocks * tf
    row_partial = (n % tr) != 0
    col_partial = (f % tf) != 0

    def kernel(x_ref, o_ref):
        fi = pl.program_id(0)
        ri = pl.program_id(1)

        @pl.when(ri == 0)
        def _():
            o_ref[...] = jnp.zeros_like(o_ref)

        x_t = x_ref[...].astype(jnp.float32)          # native dtype in, f32 math
        valid = jnp.logical_not(jnp.isnan(x_t))
        # Static (trace-time) decision: emit boundary masks only when the
        # block does not evenly divide the array -> no per-element cost in
        # the common aligned case, and no padded HBM copy of x ever.
        if row_partial:
            rid = ri * tr + lax.broadcasted_iota(jnp.int32, (tr, tf), 0)
            valid = jnp.logical_and(valid, rid < n)
        if col_partial:
            cid = fi * tf + lax.broadcasted_iota(jnp.int32, (tr, tf), 1)
            valid = jnp.logical_and(valid, cid < f)

        xz = jnp.where(valid, x_t, 0.0)
        cnt_b = jnp.sum(valid.astype(jnp.float32), axis=0, keepdims=True)
        sum_b = jnp.sum(xz, axis=0, keepdims=True)
        cnt_b_safe = jnp.maximum(cnt_b, 1.0)

        # Shifted sum-of-squares (shift via EUP approx reciprocal; the
        # correction term keeps the result exact for *any* shift, matching
        # the torch code).
        shift = sum_b * pl.reciprocal(cnt_b_safe, approx=True)
        temp = jnp.where(valid, x_t - shift, 0.0)
        corr = jnp.sum(temp, axis=0, keepdims=True)
        m2_b = jnp.sum(temp * temp, axis=0, keepdims=True) - corr * corr / cnt_b_safe

        # Chan's parallel merge with the running accumulator (safe when either
        # side has zero count, e.g. first tile or all-NaN / masked columns).
        sum_a = o_ref[0:1, :]
        cnt_a = o_ref[1:2, :]
        m2_a = o_ref[2:3, :]
        cnt_u = cnt_a + cnt_b
        mean_a = sum_a / jnp.maximum(cnt_a, 1.0)
        mean_b = sum_b / cnt_b_safe
        delta = mean_b - mean_a
        m2_u = m2_a + m2_b + delta * delta * cnt_a * cnt_b / jnp.maximum(cnt_u, 1.0)

        o_ref[0:1, :] = sum_a + sum_b
        o_ref[1:2, :] = cnt_u
        o_ref[2:3, :] = m2_u

    out = pl.pallas_call(
        kernel,
        out_shape=jax.ShapeDtypeStruct((8, f_pad), jnp.float32),
        grid=(n_feat_blocks, n_row_blocks),            # reduction (rows) last
        in_specs=[pl.BlockSpec((tr, tf), lambda fi, ri: (ri, fi))],
        out_specs=pl.BlockSpec((8, tf), lambda fi, ri: (0, fi)),
        compiler_params=pltpu.CompilerParams(
            dimension_semantics=("parallel", "arbitrary"),
            vmem_limit_bytes=48 * 1024 * 1024),
    )(x)
    return out[0, :f], out[1, :f], out[2, :f]          # sum, count, unnorm. var


# --------------------------------------------------------------------------
# Pallas kernel 2: tiled PCA transform  out = (x - mean) @ components.T
# --------------------------------------------------------------------------
def pca_transform(x, mean, components, *, tile_m=512, tile_k=512):
    n, f = x.shape
    k = components.shape[0]
    tm = min(_round_up(tile_m, 8), _round_up(n, 8))
    tk = min(_round_up(tile_k, 128), _round_up(f, 128))
    tn = 128                                           # lane-dense output tile
    n_m_blocks = pl.cdiv(n, tm)
    n_f_blocks = pl.cdiv(f, tk)
    f_pad = n_f_blocks * tk
    k_pad = _round_up(k, tn)
    col_partial = (f % tk) != 0

    # Small operands only are padded (mean: 1xF, components: KxF); x itself is
    # streamed unpadded and its ragged trailing F block is masked in-kernel.
    meanp = jnp.pad(mean.reshape(1, f).astype(jnp.float32),
                    ((0, 0), (0, f_pad - f)))
    # Pre-transposed (F, K) bf16 components: feeds the MXU without an
    # in-kernel transpose; zero-padded K columns make the output lane-dense.
    comp_t = jnp.pad(components.astype(jnp.float32),
                     ((0, k_pad - k), (0, f_pad - f))).T.astype(jnp.bfloat16)

    def kernel(x_ref, mean_ref, comp_ref, o_ref, acc_ref):
        kk = pl.program_id(2)

        @pl.when(kk == 0)
        def _():
            acc_ref[...] = jnp.zeros_like(acc_ref)

        # subtract in f32, cast operands to bf16 for the MXU, accumulate f32
        xc = x_ref[...].astype(jnp.float32) - mean_ref[...]
        if col_partial:  # static: only emitted when the F tiling is ragged
            cid = kk * tk + lax.broadcasted_iota(jnp.int32, xc.shape, 1)
            xc = jnp.where(cid < f, xc, 0.0)
        acc_ref[...] += jnp.dot(xc.astype(jnp.bfloat16), comp_ref[...],
                                preferred_element_type=jnp.float32)

        @pl.when(kk == pl.num_programs(2) - 1)
        def _():
            o_ref[...] = acc_ref[...].astype(o_ref.dtype)

    out = pl.pallas_call(
        kernel,
        out_shape=jax.ShapeDtypeStruct((n, k_pad), jnp.float32),
        grid=(n_m_blocks, k_pad // tn, n_f_blocks),
        in_specs=[
            pl.BlockSpec((tm, tk), lambda i, j, kk: (i, kk)),
            pl.BlockSpec((1, tk), lambda i, j, kk: (0, kk)),
            pl.BlockSpec((tk, tn), lambda i, j, kk: (kk, j)),
        ],
        out_specs=pl.BlockSpec((tm, tn), lambda i, j, kk: (i, j)),
        scratch_shapes=[pltpu.VMEM((tm, tn), jnp.float32)],
        compiler_params=pltpu.CompilerParams(
            dimension_semantics=("parallel", "parallel", "arbitrary"),
            vmem_limit_bytes=48 * 1024 * 1024),
    )(x, meanp, comp_t)
    return out[:, :k].astype(x.dtype)


# --------------------------------------------------------------------------
# Plain-JAX glue mirroring the torch module semantics.
# --------------------------------------------------------------------------
def _merge_mean_and_var(new_sum, new_cnt, new_uvar,
                        last_mean, last_var, last_cnt):
    last_sum = last_mean * last_cnt
    upd_cnt = last_cnt + new_cnt
    upd_mean = (last_sum + new_sum) / upd_cnt

    last_uvar = last_var * last_cnt
    # guard last_cnt == 0 so no inf/NaN intermediates are produced; the final
    # where still selects new_uvar for those columns (same result as torch).
    safe_last = jnp.maximum(last_cnt, 1.0)
    last_over_new = safe_last / new_cnt
    upd_uvar = (last_uvar + new_uvar
                + last_over_new / upd_cnt
                * (last_sum / last_over_new - new_sum) ** 2)
    upd_uvar = jnp.where(last_cnt == 0, new_uvar, upd_uvar)
    upd_var = upd_uvar / upd_cnt
    return upd_mean, upd_var, upd_cnt


def svd_flip(u, v):
    # u_based_decision=False (as used by the module)
    max_abs_rows = jnp.argmax(jnp.abs(v), axis=1)
    signs = jnp.sign(v[jnp.arange(v.shape[0]), max_abs_rows])
    return u * signs, v * signs[:, None]


def init_state(n_components):
    return {
        "n_components": n_components,
        "n_samples_seen": jnp.zeros((1,), jnp.float32),
        "mean": jnp.zeros((1,), jnp.float32),
        "var": jnp.zeros((1,), jnp.float32),
        "components": None,
        "singular_values": None,
        "explained_variance": None,
        "explained_variance_ratio": None,
        "noise_variance": None,
    }


def incremental_pca_forward(state, x, training=True):
    n_samples, n_features = x.shape
    k = state["n_components"]
    state = dict(state)
    if state["components"] is None:                  # .initialize(x)
        assert 1 <= k <= n_features and k <= n_samples
        state["components"] = jnp.zeros((k, n_features), jnp.float32)

    if training:
        new_sum, new_cnt, new_uvar = col_stats(x)
        last_cnt = jnp.broadcast_to(state["n_samples_seen"], (n_features,))
        col_mean, col_var, n_total = _merge_mean_and_var(
            new_sum, new_cnt, new_uvar,
            state["mean"], state["var"], last_cnt)
        n_total_samples = n_total[0]

        # "first fit" test done on host state (no device->host sync needed)
        if state["singular_values"] is None:
            X = x - col_mean
        else:
            # reuse the Pallas column sums; equals torch.mean(x, 0) for the
            # NaN-free case handled by the original module
            col_batch_mean = new_sum / new_cnt
            X = x - col_batch_mean
            mean_correction = jnp.sqrt(
                state["n_samples_seen"][0] / n_total_samples * n_samples
            ) * (state["mean"] - col_batch_mean)
            X = jnp.vstack((
                state["singular_values"][:, None] * state["components"],
                X,
                mean_correction[None, :],
            ))

        # TODO(synk): torch runs this SVD in float64; jnp.linalg.svd has no
        # Pallas equivalent and TPU defaults to float32, so it stays in JAX.
        U, S, Vt = jnp.linalg.svd(X.astype(jnp.float32), full_matrices=False)
        U, Vt = svd_flip(U, Vt)
        U, S, Vt = U.astype(x.dtype), S.astype(x.dtype), Vt.astype(x.dtype)

        explained_variance = S ** 2 / (n_total_samples - 1.0)
        explained_variance_ratio = S ** 2 / jnp.sum(col_var * n_total_samples)

        state["n_samples_seen"] = jnp.reshape(n_total_samples, (1,))
        state["components"] = Vt[:k]
        state["singular_values"] = S[:k]
        state["mean"] = col_mean
        state["var"] = col_var
        state["explained_variance"] = explained_variance[:k]
        state["explained_variance_ratio"] = explained_variance_ratio[:k]
        if k < n_features:
            state["noise_variance"] = jnp.mean(explained_variance[k:])
        else:
            state["noise_variance"] = jnp.float32(0.0)

    mean_full = jnp.broadcast_to(state["mean"], (n_features,))
    out = pca_transform(x, mean_full, state["components"])
    return out, state


if __name__ == "__main__":
    key = jax.random.PRNGKey(0)
    k1, k2, k3, k4 = jax.random.split(key, 4)

    # ---- tiled unit test of the stats kernel (multi-tile merge + ragged F) --
    x2 = jax.random.normal(k1, (64, 200), dtype=jnp.float32)
    x2 = x2.at[3, 7].set(jnp.nan).at[10, 150].set(jnp.nan)
    s, c, uv = col_stats(x2, tile_rows=16, tile_feats=128)   # grid (2, 4)
    mask = jnp.isnan(x2)
    ref_cnt = jnp.sum(~mask, axis=0).astype(jnp.float32)
    ref_sum = jnp.nansum(x2, axis=0)
    ref_mean = ref_sum / ref_cnt
    ref_uvar = jnp.nansum((x2 - ref_mean) ** 2, axis=0)
    assert jnp.allclose(s, ref_sum, atol=1e-3, rtol=1e-3)
    assert jnp.allclose(c, ref_cnt)
    assert jnp.allclose(uv, ref_uvar, atol=1e-2, rtol=1e-3)

    # ---- ragged-row + ragged-feature variant of the stats kernel ----
    x2b = x2[:50]
    s, c, uv = col_stats(x2b, tile_rows=16, tile_feats=128)  # partial row block
    mask = jnp.isnan(x2b)
    ref_cnt = jnp.sum(~mask, axis=0).astype(jnp.float32)
    ref_sum = jnp.nansum(x2b, axis=0)
    ref_mean = ref_sum / ref_cnt
    ref_uvar = jnp.nansum((x2b - ref_mean) ** 2, axis=0)
    assert jnp.allclose(s, ref_sum, atol=1e-3, rtol=1e-3)
    assert jnp.allclose(c, ref_cnt)
    assert jnp.allclose(uv, ref_uvar, atol=1e-2, rtol=1e-3)

    # ---- tiled unit test of the transform kernel (2 F-steps, 2 row-steps) ----
    comp2 = jax.random.normal(k2, (8, 200), dtype=jnp.float32)
    mean2 = jax.random.normal(k3, (200,), dtype=jnp.float32)
    x3 = jax.random.normal(k4, (64, 200), dtype=jnp.float32)
    out2 = pca_transform(x3, mean2, comp2, tile_m=32, tile_k=128)
    xc_ref = (x3 - mean2).astype(jnp.bfloat16).astype(jnp.float32)
    c_ref = comp2.astype(jnp.bfloat16).astype(jnp.float32)
    ref2 = xc_ref @ c_ref.T
    assert out2.shape == (64, 8)
    assert jnp.allclose(out2, ref2, atol=5e-3, rtol=5e-3)

    # ---- full forward pass (small shapes consistent with the module) ----
    n_samples, n_features, n_components = 16, 32, 8
    x = jax.random.normal(jax.random.PRNGKey(1),
                          (n_samples, n_features), dtype=jnp.float32)
    state = init_state(n_components)
    out, state = incremental_pca_forward(state, x, training=True)
    out = jax.block_until_ready(out)
    assert out.shape == (n_samples, n_components)
    xc = (x - state["mean"]).astype(jnp.bfloat16).astype(jnp.float32)
    cc = state["components"].astype(jnp.bfloat16).astype(jnp.float32)
    ref_out = xc @ cc.T
    assert jnp.allclose(out, ref_out, atol=5e-3, rtol=5e-3)
    assert bool(jnp.all(jnp.isfinite(out)))

    # second training step exercises the incremental (vstack) branch
    x_next = jax.random.normal(jax.random.PRNGKey(2),
                               (n_samples, n_features), dtype=jnp.float32)
    out_next, state = incremental_pca_forward(state, x_next, training=True)
    out_next = jax.block_until_ready(out_next)
    assert out_next.shape == (n_samples, n_components)
    assert bool(jnp.all(jnp.isfinite(out_next)))

    print("KERNEL_OK")
</pallas_src>

<mosaic_0001>
module attributes {stable_mosaic.version = 11 : i64} {
  func.func @kernel(%arg0: i32, %arg1: i32, %arg2: memref<16x128xf32, #tpu.memory_space<vmem>>, %arg3: memref<8x128xf32, #tpu.memory_space<vmem>>) attributes {dimension_semantics = [#tpu.dimension_semantics<parallel>, #tpu.dimension_semantics<arbitrary>], iteration_bounds = array<i64: 2, 4>, scalar_prefetch = 0 : i64, scratch_operands = 0 : i64, tpu.core_type = #tpu.core_type<tc>, window_params = [{transform_indices = @transform_0, window_bounds = array<i64: 16, 128>}, {transform_indices = @transform_1, window_bounds = array<i64: 8, 128>}]} {
    %c0_i32 = arith.constant 0 : i32
    %0 = arith.cmpi eq, %arg1, %c0_i32 : i32
    %1 = arith.extui %0 : i1 to i32
    %c0_i32_0 = arith.constant 0 : i32
    %2 = arith.cmpi ne, %1, %c0_i32_0 : i32
    scf.if %2 {
      %cst_21 = arith.constant 0.000000e+00 : f32
      %58 = vector.broadcast %cst_21 : f32 to vector<8x128xf32>
      %c0_22 = arith.constant 0 : index
      %c0_23 = arith.constant 0 : index
      %59 = vector.load %arg3[%c0_22, %c0_23] : memref<8x128xf32, #tpu.memory_space<vmem>>, vector<8x128xf32>
      tpu.vector_store %arg3[%c0_22, %c0_23], %58 {strides = array<i32>} : memref<8x128xf32, #tpu.memory_space<vmem>>, vector<8x128xf32>,
    } else {
    }
    %c0 = arith.constant 0 : index
    %c0_1 = arith.constant 0 : index
    %3 = vector.load %arg2[%c0, %c0_1] : memref<16x128xf32, #tpu.memory_space<vmem>>, vector<16x128xf32>
    %4 = arith.cmpf one, %3, %3 : vector<16x128xf32>
    %cst = arith.constant dense<true> : vector<16x128xi1>
    %5 = arith.xori %4, %cst : vector<16x128xi1>
    %c128_i32 = arith.constant 128 : i32
    %6 = arith.muli %arg0, %c128_i32 : i32
    %7 = tpu.iota {dimensions = array<i32: 1>} : vector<16x128xi32>
    %8 = vector.broadcast %6 : i32 to vector<16x128xi32>
    %9 = arith.addi %8, %7 : vector<16x128xi32>
    %c200_i32 = arith.constant 200 : i32
    %10 = vector.broadcast %c200_i32 : i32 to vector<16x128xi32>
    %11 = arith.cmpi slt, %9, %10 : vector<16x128xi32>
    %12 = arith.andi %5, %11 : vector<16x128xi1>
    %cst_2 = arith.constant 0.000000e+00 : f32
    %13 = vector.broadcast %cst_2 : f32 to vector<16x128xf32>
    %14 = arith.select %12, %3, %13 : vector<16x128xi1>, vector<16x128xf32>
    %15 = arith.extui %12 : vector<16x128xi1> to vector<16x128xi32>
    %16 = arith.sitofp %15 : vector<16x128xi32> to vector<16x128xf32>
    %cst_3 = arith.constant dense<0.000000e+00> : vector<128xf32>
    %17 = vector.multi_reduction <add>, %16, %cst_3 [0] : vector<16x128xf32> to vector<128xf32>
    %18 = vector.shape_cast %17 : vector<128xf32> to vector<1x128xf32>
    %cst_4 = arith.constant dense<0.000000e+00> : vector<128xf32>
    %19 = vector.multi_reduction <add>, %14, %cst_4 [0] : vector<16x128xf32> to vector<128xf32>
    %20 = vector.shape_cast %19 : vector<128xf32> to vector<1x128xf32>
    %cst_5 = arith.constant 1.000000e+00 : f32
    %21 = vector.broadcast %cst_5 : f32 to vector<1x128xf32>
    %22 = arith.maximumf %18, %21 : vector<1x128xf32>
    %23 = tpu.reciprocal %22 {approx = true} : vector<1x128xf32> -> vector<1x128xf32>
    %24 = arith.mulf %20, %23 : vector<1x128xf32>
    %25 = vector.broadcast %24 : vector<1x128xf32> to vector<16x128xf32>
    %26 = arith.subf %3, %25 : vector<16x128xf32>
    %cst_6 = arith.constant 0.000000e+00 : f32
    %27 = vector.broadcast %cst_6 : f32 to vector<16x128xf32>
    %28 = arith.select %12, %26, %27 : vector<16x128xi1>, vector<16x128xf32>
    %cst_7 = arith.constant dense<0.000000e+00> : vector<128xf32>
    %29 = vector.multi_reduction <add>, %28, %cst_7 [0] : vector<16x128xf32> to vector<128xf32>
    %30 = vector.shape_cast %29 : vector<128xf32> to vector<1x128xf32>
    %31 = arith.mulf %28, %28 : vector<16x128xf32>
    %cst_8 = arith.constant dense<0.000000e+00> : vector<128xf32>
    %32 = vector.multi_reduction <add>, %31, %cst_8 [0] : vector<16x128xf32> to vector<128xf32>
    %33 = vector.shape_cast %32 : vector<128xf32> to vector<1x128xf32>
    %34 = arith.mulf %30, %30 : vector<1x128xf32>
    %35 = arith.divf %34, %22 : vector<1x128xf32>
    %36 = arith.subf %33, %35 : vector<1x128xf32>
    %c0_9 = arith.constant 0 : index
    %c0_10 = arith.constant 0 : index
    %37 = vector.load %arg3[%c0_9, %c0_10] : memref<8x128xf32, #tpu.memory_space<vmem>>, vector<1x128xf32>
    %c1 = arith.constant 1 : index
    %c0_11 = arith.constant 0 : index
    %38 = vector.load %arg3[%c1, %c0_11] : memref<8x128xf32, #tpu.memory_space<vmem>>, vector<1x128xf32>
    %c2 = arith.constant 2 : index
    %c0_12 = arith.constant 0 : index
    %39 = vector.load %arg3[%c2, %c0_12] : memref<8x128xf32, #tpu.memory_space<vmem>>, vector<1x128xf32>
    %40 = arith.addf %38, %18 : vector<1x128xf32>
    %cst_13 = arith.constant 1.000000e+00 : f32
    %41 = vector.broadcast %cst_13 : f32 to vector<1x128xf32>
    %42 = arith.maximumf %38, %41 : vector<1x128xf32>
    %43 = arith.divf %37, %42 : vector<1x128xf32>
    %44 = arith.divf %20, %22 : vector<1x128xf32>
    %45 = arith.subf %44, %43 : vector<1x128xf32>
    %46 = arith.addf %39, %36 : vector<1x128xf32>
    %47 = arith.mulf %45, %45 : vector<1x128xf32>
    %48 = arith.mulf %47, %38 : vector<1x128xf32>
    %49 = arith.mulf %48, %18 : vector<1x128xf32>
    %cst_14 = arith.constant 1.000000e+00 : f32
    %50 = vector.broadcast %cst_14 : f32 to vector<1x128xf32>
    %51 = arith.maximumf %40, %50 : vector<1x128xf32>
    %52 = arith.divf %49, %51 : vector<1x128xf32>
    %53 = arith.addf %46, %52 : vector<1x128xf32>
    %54 = arith.addf %37, %20 : vector<1x128xf32>
    %c0_15 = arith.constant 0 : index
    %c0_16 = arith.constant 0 : index
    %55 = vector.load %arg3[%c0_15, %c0_16] : memref<8x128xf32, #tpu.memory_space<vmem>>, vector<1x128xf32>
    tpu.vector_store %arg3[%c0_15, %c0_16], %54 {strides = array<i32>} : memref<8x128xf32, #tpu.memory_space<vmem>>, vector<1x128xf32>,
    %c1_17 = arith.constant 1 : index
    %c0_18 = arith.constant 0 : index
    %56 = vector.load %arg3[%c1_17, %c0_18] : memref<8x128xf32, #tpu.memory_space<vmem>>, vector<1x128xf32>
    tpu.vector_store %arg3[%c1_17, %c0_18], %40 {strides = array<i32>} : memref<8x128xf32, #tpu.memory_space<vmem>>, vector<1x128xf32>,
    %c2_19 = arith.constant 2 : index
    %c0_20 = arith.constant 0 : index
    %57 = vector.load %arg3[%c2_19, %c0_20] : memref<8x128xf32, #tpu.memory_space<vmem>>, vector<1x128xf32>
    tpu.vector_store %arg3[%c2_19, %c0_20], %53 {strides = array<i32>} : memref<8x128xf32, #tpu.memory_space<vmem>>, vector<1x128xf32>,
    return
  }
  func.func @transform_0(%arg0: i32, %arg1: i32) -> (i32, i32) {
    %c0_i32 = arith.constant 0 : i32
    return %arg1, %arg0 : i32, i32
  }
  func.func @transform_1(%arg0: i32, %arg1: i32) -> (i32, i32) {
    %c0_i32 = arith.constant 0 : i32
    %c0_i32_0 = arith.constant 0 : i32
    return %c0_i32, %arg0 : i32, i32
  }
}

</mosaic_0001>

<bundles_post_ra>
// kernel: tpu_custom_call.1
= control target key start
LH: loop header
LB: loop body
LE: loop exit
PB: predicated region body
PF: predicated region fallthrough
CT: control target
= control target key end

     0   :  { %6 = vsyncpa [#allocation3], 0  ;;  %s898_s0 = inlined_call_operand.hbm [shape: f32[64,200], index: 0, kind: input, shape index: {}]   ;;  %s899_s1 = inlined_call_operand.hbm [shape: f32[8,256], index: 1, kind: output, shape index: {}]  }
   0x1   :  { %8 = vsyncpa [#allocation3 + $0x1], 0 }
   0x2   :  { %9 = vsyncpa [#allocation4], 0 }
   0x3   :  { %11 = vsyncpa [#allocation4 + $0x1], 0  ;;  %s642_s6 = smov 0   ;;  %s644_s7 = smov 0  }
   0x4   :  { %s646_s8 = smov 0   ;;  %s648_s9 = smov 0  }
   0x5   :  { %s650_s10 = smov 0   ;;  %s652_s11 = smov 0  }
   0x6   :  { %s654_s12 = smov 0   ;;  %s656_s13 = smov 0  }
   0x7   :  { %s658_s14 = smov 0   ;;  %s660_s15 = smov 0  }
   0x8   :  { %s662_s16 = smov 0  }
   0x9 LB: > { %s336_s17 = sadd.s32 4294967295, %s622_s16   ;;  %s337_s18 = sadd.s32 4294967294, %s622_s16   ;;  %s622_s16 = sphi %s662_s16, %s17_s16   ;;  %s618_s15 = sphi %s660_s15, %s921_s15   ;;  %s614_s14 = sphi %s658_s14, %s920_s14   ;;  %s610_s13 = sphi %s656_s13, %s919_s13   ;;  %s606_s12 = sphi %s654_s12, %s918_s12   ;;  %s602_s11 = sphi %s652_s11, %s917_s11   ;;  %s598_s10 = sphi %s650_s10, %s916_s10   ;;  %s594_s9 = sphi %s648_s9, %s915_s9   ;;  %s590_s8 = sphi %s646_s8, %s914_s8   ;;  %s586_s7 = sphi %s644_s7, %s913_s7   ;;  %s582_s6 = sphi %s642_s6, %s912_s6  }
   0xa   : > { %s26_s19 = sadd.s32 1, %s614_s14  ;;  %s29_s20 = sadd.s32 1, %s618_s15 }
   0xb   : > { %p27_p0 = scmp.ge.s32.totalorder %s26_s19, 4  ;;  %s38_s21 = sadd.s32 1, %s602_s11 }
   0xc   : > { %p45_p1 = scmp.ne.s32.totalorder %s602_s11, %s598_s10  ;;  %p46_p2 = scmp.eq.s32.totalorder %s622_s16, 0 }
   0xd   : > { %s923_s19 = smov (%p27_p0, %s26_s19), 0  ;;  %s925_s20 = smov (!%p27_p0, %s29_s20), %s618_s15 }
   0xe   : > { %s33_s22 = ssub.s32 %s614_s14, %s923_s19  ;;  %p708_p3 = por %p46_p2, %p45_p1 }
   0xf   : > { %p31_p4 = scmp.ge.s32.totalorder %s925_s20, 2  ;;  %p51_p5 = scmp.ne.s32.totalorder %s598_s10, %s594_s9 }
  0x10   : > { %p52_p6 = scmp.eq.s32.totalorder %s336_s17, 0  ;;  %s64_s24 = sadd.s32 1, %s590_s8 }
  0x11   : > { %s927_s20 = smov (%p31_p4, %s925_s20), 0  ;;  %p74_p8 = scmp.ne.s32.totalorder %s590_s8, %s586_s7 }
  0x12   : > { %p716_p7 = por %p52_p6, %p51_p5  ;;  %s34_s26 = ssub.s32 %s618_s15, %s927_s20 }
  0x13   : > { %p75_p9 = scmp.eq.s32.totalorder %s336_s17, 7  ;;  %s35_s27 = sor.u32 %s34_s26, %s33_s22 }
  0x14   : > { %p62_p10 = scmp.eq.s32.totalorder %s34_s26, 0  ;;  %p36_p11 = scmp.eq.s32.totalorder %s35_s27, 0 }
  0x15   : > { %p724_p12 = por %p75_p9, %p74_p8  ;;  %p80_p13 = scmp.ne.s32.totalorder %s586_s7, %s582_s6 }
  0x16   : > { %s729_s29 = scalar_select %p62_p10, %s590_s8, %s64_s24  }
  0x17   : > { %s903_s28 = scalar_select %p724_p12, 1, 0 }
  0x18   : > { %s732_s30 = scalar_select %p36_p11, %s602_s11, %s38_s21  }
  0x19   : > { %p81_p0 = scmp.eq.s32.totalorder %s337_s18, 7  ;;  %p368_p1 = scmp.lt.s32.totalorder %s622_s16, 8 }
  0x1a   : > { %s101_s3 = sand.u32 1, %s602_s11   ;;  %s355_s5 = sshll.u32 %s614_s14, 2 }
  0x1b   : > { %p737_p2 = por %p81_p0, %p80_p13  ;;  %s340_s4 = sshll.u32 %s101_s3, 4 }
  0x1c   : > { %s111_s9 = sadd.s32 %s618_s15, %s355_s5  ;;  %s105_s17 = scalar_lea.vmem [#allocation2], %s340_s4 }
  0x1d   : > { %s904_s2 = scalar_select %p737_p2, 1, 0 }
  0x1e   : > { %s114_s22 = sshll.u32 %s105_s17, 4  ;;  %s343_s26 = sshll.u32 %s111_s9, 7  ;;  %s744_s22 = int_to_ptr.vmem [resolvable:$true] %s114_s22 }
  0x1f   : > { %s749_s21 = scalar_lea.hbm %s898_s0, %s343_s26  ;;  %p753_p4 = pnand %p368_p1, %p708_p3 }
  0x20   : > { %s757_s4 = scalar_lea.sflag [#allocation3], %s101_s3  ;;  %s470_s5 = scalar_lea.hbm %s749_s21, 256 }
  0x21   : > { %p471_p5 = scmp.ne.s32.totalorder %s749_s21, %s470_s5  ;;  %p472_p6 = pneg %p753_p4 }
  0x22   : > { %s475_s17 = scalar_lea.hbm %s898_s0, 2048  ;;  %p476_p3 = scmp.lt.u32.totalorder %s749_s21, %s898_s0 }
  0x23   : > { %p473_p8 = pnand %p472_p6, %p471_p5  ;;  %p477_p10 = scmp.lt.u32.totalorder %s475_s17, %s470_s5 }
  0x24   : > { %p479_p13 = scmp.lt.u32.totalorder %s470_s5, %s749_s21 }
  0x25   : > { %p474_p9 = pneg %p473_p8  ;;  %p478_p11 = por %p477_p10, %p476_p3 }
  0x27   : > { %p480_p0 = por %p479_p13, %p478_p11 }
  0x29   : > { %p481_p1 = pnand %p480_p0, %p474_p9 }
  0x2b   : > { %484 = shalt.err (!%p481_p1)
}
  0x2c   : > { %s485_s3 = scalar_lea.vmem %s744_s22, 256  ;;  %s624_s27 = smov [#allocation2]  }
  0x2d   : > { %p486_p5 = scmp.ne.s32.totalorder %s744_s22, %s485_s3  ;;  %s490_s23 = sshll.u32 %s624_s27, 4  ;;  %s491_s23 = int_to_ptr.vmem [resolvable:$false] %s490_s23 }
  0x2e   : > { %s492_s9 = scalar_lea.vmem %s491_s23, 512  ;;  %p493_p12 = scmp.lt.s32.totalorder %s744_s22, %s491_s23 }
  0x2f   : > { %p488_p8 = pnand %p486_p5, %p472_p6  ;;  %p494_p3 = scmp.lt.s32.totalorder %s492_s9, %s485_s3 }
  0x31   : > { %p489_p2 = pneg %p488_p8  ;;  %p495_p10 = por %p494_p3, %p493_p12 }
  0x33   : > { %p496_p11 = pnand %p495_p10, %p489_p2 }
  0x35   : > { %499 = shalt.err (!%p496_p11)
}
  0x36   : > { %s625_s5 = smov 256   ;;  %s626_s17 = smov 128  }
  0x37   : > { %s627_s26 = smov 8   ;;  %p344_p6 = scmp.ge.s32.totalorder %s622_s16, 1 }
  0x38   : > { %363 = dma.hbm_to_vmem [thread:$0]  (!%p753_p4), %s749_s21, 256, %s744_s22, %s757_s4, %s625_s5, %s626_s17, %s627_s26  }
  0x39   : > { %p122_p9 = scmp.lt.s32.totalorder %s622_s16, 9 }
  0x3b   : > { %p123_p13 = pnand %p344_p6, %p122_p9 }
  0x3c   : > { %s128_s24 = sand.u32 (!%p123_p13), 1, %s598_s10  }
  0x3d   : > { %126 = sbr.rel (%p123_p13) target bundleno = 158 (0x9e), region = 24  ;;  %s345_s3 = sshll.u32 (!%p123_p13), %s128_s24, 4 }
  0x3e   : > { %s129_s27 = scalar_lea.sflag (!%p123_p13), [#allocation3], %s128_s24  ;;  %s132_s23 = scalar_lea.vmem (!%p123_p13), [#allocation2], %s345_s3 }
  0x44   : > { %573 = dma.done.wait (%p716_p7), %s129_s27, 256  }
  0x45   : > { %575 = vsyncadd (%p716_p7), %s129_s27, 4294967040  ;;  %s148_s9 = sand.u32 1, %s586_s7   ;;  %p347_p12 = scmp.ne.s32.totalorder %s606_s12, 0 }
  0x46   : > { %s346_s22 = sshll.u32 %s148_s9, 3  ;;  %v628_v0 = vmov (!%p347_p12), 0.0  }
  0x47   : > { %s795_s21 = scalar_lea.vmem [#allocation5], %s346_s22  ;;  %155 = sbr.rel (%p347_p12) target bundleno = 78 (0x4e), region = 32 }
  0x48   : > { %156 = vst [vmem:[%s795_s21] sm:$0xff] (!%p347_p12), %v628_v0 }
  0x4e PF: > { %v157_v1 = vld [vmem:[%s132_s23] sm:$0xff]  ;;  %v158_v2 = vld [vmem:[%s132_s23 + $0x8] sm:$0xff]  ;;  %s348_s25 = sshll.u32 %s610_s13, 7  ;;  %v164_v3 = vlaneseq  ;;  %vm629_vm2 = vmmov 1   ;;  %v630_v10 = vmov 0.0   ;;  %s253_s12 = sshll.u32 %s795_s21, 4  ;;  %s835_s12 = int_to_ptr.vmem [resolvable:$true] %s253_s12 }
  0x4f   : > { %vm159_vm0 = vcmp.ne.f32.partialorder %v157_v1, %v157_v1  ;;  %v166_v4 = vstv %s348_s25  ;;  %vm160_vm1 = vcmp.ne.f32.partialorder %v158_v2, %v158_v2  ;;  %v219_v26 = vld [vmem:[%s795_s21 + $0x1] sm:$0x1]  ;;  %v218_v29 = vld [vmem:[%s795_s21] sm:$0x1]  ;;  %s833_s5 = scalar_lea.hbm %s899_s1, %s348_s25  ;;  %s240_s17 = scalar_lea.sflag [#allocation4], %s148_s9 }
  0x50   : > { %v165_v5 = vand.u32 127, %v164_v3  ;;  %vm161_vm3 = vmxor %vm159_vm0, %vm629_vm2  ;;  %v222_v30 = vmax.f32 %v219_v26, 1.0  ;;  %s500_s26 = scalar_lea.vmem %s835_s12, 128  ;;  %p910_p2 = scmp.ne.s32.totalorder %s903_s28, 0 }
  0x51   : > { %vm162_vm4 = vmxor %vm160_vm1, %vm629_vm2  ;;  %p501_p7 = scmp.ne.s32.totalorder %s835_s12, %s500_s26  ;;  %s631_s24 = smov [#allocation5]  }
  0x52   : > { %v167_v6 = vadd.s32 %v166_v4, %v165_v5  ;;  %s504_s13 = sshll.u32 %s631_s24, 4  ;;  %s505_s13 = int_to_ptr.vmem [resolvable:$false] %s504_s13 }
  0x53   : > { %p502_p4 = pnand %p501_p7, %p910_p2  ;;  %s506_s3 = scalar_lea.vmem %s505_s13, 256 }
  0x54   : > { %vm168_vm5 = vcmp.lt.s32.totalorder %v167_v6, 200  ;;  %p507_p1 = scmp.lt.s32.totalorder %s835_s12, %s505_s13  ;;  %p508_p5 = scmp.lt.s32.totalorder %s506_s3, %s500_s26 }
  0x55   : > { %vm802_vm6 = vmand %vm161_vm3, %vm168_vm5  ;;  %p503_p0 = pneg %p502_p4 }
  0x56   : > { %vm806_vm7 = vmand %vm162_vm4, %vm168_vm5  ;;  %v171_v9 = vsel %vm802_vm6, %v157_v1, 0.0  ;;  %v349_v11 = vsel %vm802_vm6, 1.0, %v630_v10  ;;  %p509_p8 = por %p508_p5, %p507_p1 }
  0x57   : > { %v172_v12 = vsel %vm806_vm7, %v158_v2, 0.0  ;;  %v350_v13 = vsel %vm806_vm7, 1.0, %v630_v10 }
  0x58   : > { %v177_v14 = vadd.f32 %v350_v13, %v349_v11  ;;  %v184_v15 = vadd.f32 %v172_v12, %v171_v9  ;;  %p510_p3 = pnand %p509_p8, %p503_p0 }
  0x5a   : > { %v178_v16 = vrot.slane %v177_v14, 4  ;;  %v185_v17 = vrot.slane %v184_v15, 4 }
  0x5c   : > { %v179_v18 = vadd.f32 %v178_v16, %v177_v14  ;;  %v186_v19 = vadd.f32 %v185_v17, %v184_v15 }
  0x5e   : > { %v180_v20 = vrot.slane %v179_v18, 2  ;;  %v187_v21 = vrot.slane %v186_v19, 2 }
  0x60   : > { %v181_v22 = vadd.f32 %v180_v20, %v179_v18  ;;  %v188_v23 = vadd.f32 %v187_v21, %v186_v19 }
  0x62   : > { %v182_v24 = vrot.slane %v181_v22, 1  ;;  %v189_v25 = vrot.slane %v188_v23, 1 }
  0x64   : > { %v183_v27 = vadd.f32 %v182_v24, %v181_v22  ;;  %v190_v28 = vadd.f32 %v189_v25, %v188_v23 }
  0x66   : > { %v191_v31 = vmax.f32 %v183_v27, 1.0  ;;  %v235_v32 = vadd.f32 %v218_v29, %v190_v28  ;;  %v221_v33 = vadd.f32 %v219_v26, %v183_v27 }
  0x68   : > { %464 = vrcp.f32 %v191_v31  ;;  %236 = vst [vmem:[%s795_s21] sm:$0x1] %v235_v32  ;;  %237 = vst [vmem:[%s795_s21 + $0x1] sm:$0x1] %v221_v33  ;;  %v231_v45 = vmax.f32 %v221_v33, 1.0 }
  0x69   : > { %466 = vrcp.f32 %v222_v30 }
  0x6a   : > { %468 = vrcp.f32 %v231_v45 }
  0x72   : > { %v465_v34 = vpop.eup %464 }
  0x73   : > { %v467_v35 = vpop.eup %466  ;;  %v193_v36 = vmul.f32 %v465_v34, %v190_v28 }
  0x74   : > { %v224_v39 = vmul.f32 %v467_v35, %v218_v29  ;;  %v469_v0 = vpop.eup %468 }
  0x75   : > { %v194_v37 = vsub.f32 %v157_v1, %v193_v36  ;;  %v195_v38 = vsub.f32 %v158_v2, %v193_v36  ;;  %v220_v2 = vld [vmem:[%s795_s21 + $0x2] sm:$0x1] }
  0x76   : > { %v226_v48 = vsub.f32 %v193_v36, %v224_v39 }
  0x77   : > { %v196_v40 = vsel %vm802_vm6, %v194_v37, 0.0  ;;  %v197_v41 = vsel %vm806_vm7, %v195_v38, 0.0 }
  0x78   : > { %v198_v42 = vadd.f32 %v197_v41, %v196_v40  ;;  %v205_v43 = vmul.f32 %v196_v40, %v196_v40  ;;  %v206_v44 = vmul.f32 %v197_v41, %v197_v41  ;;  %v228_v53 = vmul.f32 %v226_v48, %v226_v48 }
  0x7a   : > { %v199_v46 = vrot.slane %v198_v42, 4  ;;  %v207_v47 = vadd.f32 %v206_v44, %v205_v43  ;;  %v229_v58 = vmul.f32 %v228_v53, %v219_v26 }
  0x7c   : > { %v200_v49 = vadd.f32 %v199_v46, %v198_v42  ;;  %v208_v50 = vrot.slane %v207_v47, 4  ;;  %v230_v63 = vmul.f32 %v229_v58, %v183_v27 }
  0x7e   : > { %v201_v51 = vrot.slane %v200_v49, 2  ;;  %v209_v52 = vadd.f32 %v208_v50, %v207_v47  ;;  %v233_v4 = vmul.f32 %v469_v0, %v230_v63 }
  0x80   : > { %v202_v54 = vadd.f32 %v201_v51, %v200_v49  ;;  %v210_v55 = vrot.slane %v209_v52, 2 }
  0x82   : > { %v203_v56 = vrot.slane %v202_v54, 1  ;;  %v211_v57 = vadd.f32 %v210_v55, %v209_v52 }
  0x84   : > { %v204_v59 = vadd.f32 %v203_v56, %v202_v54  ;;  %v212_v60 = vrot.slane %v211_v57, 1 }
  0x86   : > { %v213_v61 = vadd.f32 %v212_v60, %v211_v57  ;;  %v214_v62 = vmul.f32 %v204_v59, %v204_v59 }
  0x88   : > { %v216_v1 = vmul.f32 %v465_v34, %v214_v62 }
  0x8a   : > { %v217_v3 = vsub.f32 %v213_v61, %v216_v1 }
  0x8c   : > { %v227_v5 = vadd.f32 %v220_v2, %v217_v3 }
  0x8e   : > { %v234_v6 = vadd.f32 %v233_v4, %v227_v5 }
  0x90   : > { %238 = vst [vmem:[%s795_s21 + $0x2] sm:$0x1] %v234_v6 }
  0x91   : > { %513 = shalt.err (!%p510_p3)
}
  0x92   : > { %s514_s27 = scalar_lea.hbm %s833_s5, 128  ;;  %s518_s22 = scalar_lea.hbm %s899_s1, 256 }
  0x93   : > { %p515_p10 = scmp.ne.s32.totalorder %s833_s5, %s514_s27  ;;  %p519_p9 = scmp.lt.u32.totalorder %s833_s5, %s899_s1 }
  0x94   : > { %p520_p13 = scmp.lt.u32.totalorder %s518_s22, %s514_s27  ;;  %p522_p7 = scmp.lt.u32.totalorder %s514_s27, %s833_s5 }
  0x95   : > { %p516_p11 = pnand %p515_p10, %p910_p2 }
  0x96   : > { %p521_p12 = por %p520_p13, %p519_p9 }
  0x97   : > { %p517_p6 = pneg %p516_p11 }
  0x98   : > { %p523_p4 = por %p522_p7, %p521_p12 }
  0x9a   : > { %p524_p0 = pnand %p523_p4, %p517_p6 }
  0x9c   : > { %527 = shalt.err (!%p524_p0)
}
  0x9d   : > { %358 = dma.vmem_to_hbm [thread:$0]  (%p910_p2), %s835_s12, 128, %s833_s5, %s240_s17  }
  0x9e PF: > { %p369_p1 = scmp.ge.s32.totalorder %s622_s16, 2  ;;  %s265_s18 = sand.u32 1, %s582_s6  }
  0x9f   : > { %p911_p5 = scmp.ne.s32.totalorder %s904_s2, 0  ;;  %s266_s4 = scalar_lea.sflag [#allocation4], %s265_s18 }
  0xa1   : > { %p365_p8 = pnand %p369_p1, %p911_p5 }
  0xa3   : > { %577 = dma.done.wait (!%p365_p8), %s266_s4, 128  }
  0xa4   : > { %579 = vsyncadd (!%p365_p8), %s266_s4, 4294967168  ;;  %s17_s16 = sadd.s32 1, %s622_s16   ;;  %s912_s6 = smov %s586_s7 }
  0xa5   : > { %p14_p3 = scmp.ge.s32.totalorder %s17_s16, 10   ;;  %s913_s7 = smov %s590_s8 }
  0xa6   : > { %s914_s8 = smov %s729_s29  ;;  %s915_s9 = smov %s598_s10 }
  0xa7   : > { %s916_s10 = smov %s602_s11  ;;  %s917_s11 = smov %s732_s30 }
  0xa8   : > { %s918_s12 = smov %s614_s14  ;;  %s919_s13 = smov %s618_s15 }
  0xa9   : > { %s920_s14 = smov %s923_s19  ;;  %s921_s15 = smov %s927_s20 }
  0xaa   :  { %16 = sbr.rel (!%p14_p3) target bundleno = 9 (0x9), region = 73 }
  0xb1   :  { %271 = vsyncpa [#allocation3], 1 }
  0xb2   :  { %273 = vsyncpa [#allocation3 + $0x1], 1 }
  0xb3   :  { %274 = vsyncpa [#allocation4], 1 }
  0xb4   :  { %276 = vsyncpa [#allocation4 + $0x1], 1 }

</bundles_post_ra>
